<compile_context>
chip_gen: v7x
topology: tpu7x:2x2x1
jax: 0.10.0
libtpu: 0.0.40
codegen_flags: <defaults>
</compile_context>

<pallas_src>
import functools

import jax
import jax.numpy as jnp
from jax.experimental import pallas as pl
from jax.experimental.pallas import tpu as pltpu

_BN_EPS = 1e-5
_VMEM = pl.BlockSpec(memory_space=pltpu.MemorySpace.VMEM)
_VMEM_LIMIT = 24 * 1024 * 1024   # real working set is ~6 MiB double-buffered


def _round_up(x, m):
    return (x + m - 1) // m * m


# ----------------------------------------------------------------------------
# Pallas kernels
# ----------------------------------------------------------------------------
def _matmul_epilogue_kernel(a_ref, w_ref, s_ref, b_ref, *rest, relu, has_residual):
    """out = act(A(bf16) @ W(bf16) * scale + bias [+ residual]); single K step."""
    if has_residual:
        r_ref, o_ref = rest
    else:
        (o_ref,) = rest
    out = jnp.dot(a_ref[...], w_ref[...], preferred_element_type=jnp.float32)
    out = out * s_ref[...] + b_ref[...]
    if has_residual:
        out = out + r_ref[...].astype(jnp.float32)
    if relu:
        out = jnp.maximum(out, 0.0)
    o_ref[...] = out.astype(o_ref.dtype)


def _conv3x3_kernel(x_ref, w_ref, s_ref, b_ref, o_ref, *, wp, relu):
    """Fused 3x3/stride-1/pad-1 conv: 9 shifted matmuls over the flattened image.

    x_ref: (1, (H+3)*Wp, Cin) zero-padded image, row-major flattened.
    w_ref: (9, Cin, tn) tap-major weights.  o_ref: (1, H*Wp, tn); the two junk
    columns per output row (from width padding) are sliced off by the caller.
    """
    m_eff = o_ref.shape[1]
    tn = o_ref.shape[2]
    acc = jnp.zeros((m_eff, tn), jnp.float32)
    for dh in range(3):
        for dw in range(3):
            off = dh * wp + dw                       # static offset
            a = x_ref[0, off:off + m_eff, :]         # contiguous row window
            acc = acc + jnp.dot(a, w_ref[dh * 3 + dw],
                                preferred_element_type=jnp.float32)
    out = acc * s_ref[...] + b_ref[...]
    if relu:
        out = jnp.maximum(out, 0.0)
    o_ref[0] = out.astype(o_ref.dtype)


def _maxpool_kernel(xe_ref, xo_ref, o_ref):
    """3x3/stride-2/pad-1 max pool; column max + row max fused, single block."""
    b, hp, _, c = xe_ref.shape                       # hp = H + 2 (even)
    ho = o_ref.shape[1]
    wo = o_ref.shape[2]
    cmax = jnp.maximum(jnp.maximum(xe_ref[:, :, :wo, :], xo_ref[:, :, :wo, :]),
                       xe_ref[:, :, 1:wo + 1, :])    # (B, H+2, Wo, C)
    cm = cmax.reshape(b, hp // 2, 2, wo, c)          # split major dim: free
    ce = cm[:, :, 0]
    co = cm[:, :, 1]
    o_ref[...] = jnp.maximum(jnp.maximum(ce[:, :ho], co[:, :ho]), ce[:, 1:ho + 1])


def _head_kernel(f_ref, w_ref, b_ref, g_ref, beta_ref, o_ref):
    """AdaptiveAvgPool2d((1,1)) + squeeze + Linear(bf16 weights) + BatchNorm1d (f32)."""
    f = f_ref[...]                                   # (B, H*W, C) bf16, C lane-dense
    inv_hw = 1.0 / f.shape[1]
    pooled = (jnp.sum(f.astype(jnp.float32), axis=1) * inv_hw).astype(jnp.bfloat16)
    h = jnp.dot(pooled, w_ref[...], preferred_element_type=jnp.float32) + b_ref[...]
    mu = jnp.mean(h, axis=0, keepdims=True)
    var = jnp.mean((h - mu) * (h - mu), axis=0, keepdims=True)   # biased (train mode)
    o_ref[...] = (h - mu) * jax.lax.rsqrt(var + _BN_EPS) * g_ref[...] + beta_ref[...]


# ----------------------------------------------------------------------------
# Pallas wrappers
# ----------------------------------------------------------------------------
def matmul_bn_act(a, w, scale, bias, residual=None, *, relu,
                  out_dtype=jnp.bfloat16):
    """out = act((A @ W) * scale + bias [+ residual]).

    A: (M, K) bf16 activations; W: (K, N) prepared bf16 weight; scale/bias:
    (1, N) f32 folded BN.  Single K step: no accumulator scratch, no K padding.
    """
    m, k = a.shape
    n = w.shape[1]

    tm = min(256, _round_up(m, 16)) if m >= 16 else _round_up(m, 8)
    mp = _round_up(m, tm)
    if n % 128 == 0:
        tn = min(512, n)
        while n % tn:
            tn -= 128
    else:
        tn = n                                   # full-dim block for small odd N
    # v7x has 2 TensorCores sharded over "parallel" grid axes: keep >= 2 tiles on
    # a parallel axis whenever N is large enough to split (free on v5e/v6e).
    if mp // tm == 1 and n >= 512 and n % 256 == 0:
        tn = min(tn, 256)

    a = a.astype(jnp.bfloat16)
    if mp != m:
        a = jnp.pad(a, ((0, mp - m), (0, 0)))

    args = [a, w, scale, bias]
    in_specs = [
        pl.BlockSpec((tm, k), lambda i, j: (i, 0)),
        pl.BlockSpec((k, tn), lambda i, j: (0, j)),
        pl.BlockSpec((1, tn), lambda i, j: (0, j)),
        pl.BlockSpec((1, tn), lambda i, j: (0, j)),
    ]
    has_res = residual is not None
    if has_res:
        r = residual.astype(jnp.bfloat16)
        if mp != m:
            r = jnp.pad(r, ((0, mp - m), (0, 0)))
        args.append(r)
        in_specs.append(pl.BlockSpec((tm, tn), lambda i, j: (i, j)))

    cost = pl.CostEstimate(
        flops=2 * mp * n * k,
        transcendentals=0,
        bytes_accessed=(2 * (mp * k + k * n)
                        + mp * n * jnp.dtype(out_dtype).itemsize
                        + (2 * mp * n if has_res else 0) + 8 * n),
    )

    out = pl.pallas_call(
        functools.partial(_matmul_epilogue_kernel, relu=relu, has_residual=has_res),
        grid=(mp // tm, n // tn),
        in_specs=in_specs,
        out_specs=pl.BlockSpec((tm, tn), lambda i, j: (i, j)),
        out_shape=jax.ShapeDtypeStruct((mp, n), out_dtype),
        compiler_params=pltpu.CompilerParams(
            dimension_semantics=("parallel", "parallel"),
            vmem_limit_bytes=_VMEM_LIMIT),
        cost_estimate=cost,
    )(*args)

    if mp != m:
        out = out[:m]
    return out


def conv3x3_bn_relu(x, w9, scale, bias):
    """Fused Conv2d(3x3, stride 1, pad 1, bias=False) + folded BN + ReLU. NHWC."""
    b, h, w, cin = x.shape
    cout = w9.shape[2]
    wp = w + 2
    # bottom pad of 2 keeps all 9 shifted row-windows of length h*wp in bounds.
    xp = jnp.pad(x, ((0, 0), (1, 2), (1, 1), (0, 0)))
    xf = xp.reshape(b, (h + 3) * wp, cin)            # row-major: free reshape
    m_eff = h * wp
    tn = min(256, cout)
    out = pl.pallas_call(
        functools.partial(_conv3x3_kernel, wp=wp, relu=True),
        grid=(b, cout // tn),
        in_specs=[
            pl.BlockSpec((1, (h + 3) * wp, cin), lambda i, j: (i, 0, 0)),
            pl.BlockSpec((9, cin, tn), lambda i, j: (0, 0, j)),
            pl.BlockSpec((1, tn), lambda i, j: (0, j)),
            pl.BlockSpec((1, tn), lambda i, j: (0, j)),
        ],
        out_specs=pl.BlockSpec((1, m_eff, tn), lambda i, j: (i, 0, j)),
        out_shape=jax.ShapeDtypeStruct((b, m_eff, cout), jnp.bfloat16),
        compiler_params=pltpu.CompilerParams(
            dimension_semantics=("parallel", "parallel"),
            vmem_limit_bytes=_VMEM_LIMIT),
    )(xf, w9, scale, bias)
    # drop the two junk columns per output row coming from the width padding.
    return out.reshape(b, h, wp, cout)[:, :, :w, :]


def conv1x1_bn(x, wm, scale, bias, *, stride, relu, residual=None):
    """Conv2d(1x1, bias=False) + folded BN (+ residual, + ReLU). NHWC in/out."""
    if stride != 1:
        x = x[:, ::stride, ::stride, :]
    b, ho, wo, c = x.shape
    a = x.reshape(b * ho * wo, c)
    r = residual.reshape(b * ho * wo, -1) if residual is not None else None
    out = matmul_bn_act(a, wm, scale, bias, r, relu=relu)
    return out.reshape(b, ho, wo, wm.shape[1])


def conv_patches_bn(x, wm, scale, bias, *, k, stride, padding, relu):
    """Conv via im2col patches + fused matmul epilogue (stem + stride-2 3x3 only)."""
    patches = jax.lax.conv_general_dilated_patches(
        x, (k, k), (stride, stride), [(padding, padding), (padding, padding)],
        dimension_numbers=("NHWC", "HWIO", "NHWC"))
    b, ho, wo, kk = patches.shape
    a = patches.reshape(b * ho * wo, kk)
    out = matmul_bn_act(a, wm, scale, bias, relu=relu)
    return out.reshape(b, ho, wo, wm.shape[1])


def maxpool_3x3_s2(x):
    """MaxPool2d(3, stride=2, padding=1), NHWC; zero padding valid (post-ReLU input)."""
    b, h, w, c = x.shape
    assert h % 2 == 0 and w % 2 == 0      # TODO(synk): odd sizes need one extra pad
    ho, wo = h // 2, w // 2
    xp = jnp.pad(x, ((0, 0), (1, 1), (1, 1), (0, 0)))     # (B, H+2, W+2, C)
    xe = xp[:, :, 0::2, :]                                 # even columns
    xo = xp[:, :, 1::2, :]                                 # odd columns
    return pl.pallas_call(
        _maxpool_kernel,
        in_specs=[_VMEM, _VMEM],
        out_specs=_VMEM,
        out_shape=jax.ShapeDtypeStruct((b, ho, wo, c), x.dtype),
    )(xe, xo)


def encoder_head(feat, fc_w, fc_b, bn_g, bn_b):
    # feat: (B, h, w, 2048) NHWC.  NOTE: torch .squeeze() would also drop the batch
    # dim when B == 1; here B > 1 so squeeze -> (B, 2048).
    b, h, w, c = feat.shape
    e = fc_w.shape[1]
    f = feat.reshape(b, h * w, c)                 # C stays lane-dense
    return pl.pallas_call(
        _head_kernel,
        out_shape=jax.ShapeDtypeStruct((b, e), jnp.float32),
        in_specs=[_VMEM] * 5,
        out_specs=_VMEM,
    )(f, fc_w, fc_b.reshape(1, e), bn_g.reshape(1, e), bn_b.reshape(1, e))


# ----------------------------------------------------------------------------
# Parameter preparation (hoisted out of the forward pass)
# ----------------------------------------------------------------------------
@functools.lru_cache(maxsize=None)
def _patches_channel_major():
    """Probe conv_general_dilated_patches feature ordering (channel- vs spatial-major)."""
    c, kh, kw = 2, 2, 2
    x = jnp.arange(3 * 3 * c, dtype=jnp.float32).reshape(1, 3, 3, c)
    p = jax.lax.conv_general_dilated_patches(
        x, (kh, kw), (1, 1), [(0, 0), (0, 0)],
        dimension_numbers=("NHWC", "HWIO", "NHWC"))[0, 0, 0, :]
    win = x[0, :kh, :kw, :]
    if jnp.allclose(p, win.transpose(2, 0, 1).reshape(-1)):
        return True                                   # (C, kh, kw) flattening
    if jnp.allclose(p, win.reshape(-1)):
        return False                                  # (kh, kw, C) flattening
    raise AssertionError("unexpected conv_general_dilated_patches ordering")


def make_resnet50_params(key):
    """ResNet50 backbone params, already in kernel-ready layout (bf16, BN folded)."""
    counter = [0]

    def nk():
        counter[0] += 1
        return jax.random.fold_in(key, counter[0])

    def conv_w(cout, cin, k):
        std = (2.0 / (cin * k * k)) ** 0.5
        return std * jax.random.normal(nk(), (cout, cin, k, k), jnp.float32)

    def bn_fold(c):
        # eval-mode fold with running_mean=0, running_var=1:
        #   scale = gamma / sqrt(var + eps), bias = beta - mean * scale
        gamma = 1.0 + 0.1 * jax.random.normal(nk(), (c,), jnp.float32)
        beta = 0.05 * jax.random.normal(nk(), (c,), jnp.float32)
        scale = gamma / jnp.sqrt(1.0 + _BN_EPS)
        return scale.reshape(1, c), beta.reshape(1, c)

    def prep_1x1(w):                                  # OIHW -> (Cin, Cout) bf16
        return w[:, :, 0, 0].T.astype(jnp.bfloat16)

    def prep_3x3_taps(w):                             # OIHW -> (9, Cin, Cout) bf16
        cout, cin = w.shape[0], w.shape[1]
        return jnp.transpose(w, (2, 3, 1, 0)).reshape(9, cin, cout).astype(jnp.bfloat16)

    def prep_patches(w):                              # OIHW -> (Cin*kh*kw, Cout) bf16
        cout, cin, kh, kw = w.shape
        if _patches_channel_major():
            wm = w.reshape(cout, cin * kh * kw)
        else:
            wm = jnp.transpose(w, (0, 2, 3, 1)).reshape(cout, kh * kw * cin)
        return wm.T.astype(jnp.bfloat16)

    params = {"stem_w": prep_patches(conv_w(64, 3, 7))}
    params["stem_s"], params["stem_b"] = bn_fold(64)

    layers = []
    in_c = 64
    for planes, blocks, stride in [(64, 3, 1), (128, 4, 2), (256, 6, 2), (512, 3, 2)]:
        layer = []
        for bidx in range(blocks):
            s = stride if bidx == 0 else 1
            blk = {"stride": s}
            blk["conv1_w"] = prep_1x1(conv_w(planes, in_c, 1))
            blk["bn1_s"], blk["bn1_b"] = bn_fold(planes)
            w2 = conv_w(planes, planes, 3)
            if s == 1:
                blk["conv2_w9"] = prep_3x3_taps(w2)   # fused 9-tap Pallas conv
            else:
                blk["conv2_wm"] = prep_patches(w2)    # TODO(synk): patches fallback
            blk["bn2_s"], blk["bn2_b"] = bn_fold(planes)
            blk["conv3_w"] = prep_1x1(conv_w(planes * 4, planes, 1))
            blk["bn3_s"], blk["bn3_b"] = bn_fold(planes * 4)
            if s != 1 or in_c != planes * 4:
                blk["ds_w"] = prep_1x1(conv_w(planes * 4, in_c, 1))
                blk["ds_s"], blk["ds_b"] = bn_fold(planes * 4)
            layer.append(blk)
            in_c = planes * 4
        layers.append(layer)
    params["layers"] = layers
    return params


# ----------------------------------------------------------------------------
# Forward pass
# ----------------------------------------------------------------------------
def bottleneck(x, p):
    s = p["stride"]
    if "ds_w" in p:
        identity = conv1x1_bn(x, p["ds_w"], p["ds_s"], p["ds_b"],
                              stride=s, relu=False)
    else:
        identity = x
    out = conv1x1_bn(x, p["conv1_w"], p["bn1_s"], p["bn1_b"], stride=1, relu=True)
    if s == 1:
        out = conv3x3_bn_relu(out, p["conv2_w9"], p["bn2_s"], p["bn2_b"])
    else:
        out = conv_patches_bn(out, p["conv2_wm"], p["bn2_s"], p["bn2_b"],
                              k=3, stride=s, padding=1, relu=True)
    # residual add + final ReLU are fused into conv3's matmul epilogue.
    out = conv1x1_bn(out, p["conv3_w"], p["bn3_s"], p["bn3_b"],
                     stride=1, relu=True, residual=identity)
    return out


def encoder_cnn_forward(images_nchw, rp, fc_w, fc_b, bn_g, bn_b):
    # self.resnet(images): frozen backbone (no_grad); NHWC + bf16 internally.
    x = jnp.transpose(images_nchw, (0, 2, 3, 1)).astype(jnp.bfloat16)
    x = conv_patches_bn(x, rp["stem_w"], rp["stem_s"], rp["stem_b"],
                        k=7, stride=2, padding=3, relu=True)
    x = maxpool_3x3_s2(x)
    for layer in rp["layers"]:
        for blk in layer:
            x = bottleneck(x, blk)
    # .squeeze() + self.fc + self.bn  (head kept in f32, fc weights bf16 for MXU)
    return encoder_head(x, fc_w, fc_b, bn_g, bn_b)


# ----------------------------------------------------------------------------
if __name__ == "__main__":
    embed_size = 128
    in_features = 2048  # resnet50 fc.in_features

    key = jax.random.PRNGKey(0)
    images = jax.random.normal(key, (2, 3, 64, 64), jnp.float32)   # NCHW like PyTorch

    resnet_params = make_resnet50_params(jax.random.fold_in(key, 7))

    # self.fc = nn.Linear(2048, embed_size)  (PyTorch default uniform init)
    bound = 1.0 / (in_features ** 0.5)
    fc_w = jax.random.uniform(jax.random.fold_in(key, 10_001),
                              (in_features, embed_size), jnp.float32,
                              -bound, bound).astype(jnp.bfloat16)
    fc_b = jax.random.uniform(jax.random.fold_in(key, 10_002),
                              (embed_size,), jnp.float32, -bound, bound)
    # self.bn = nn.BatchNorm1d(embed_size): weight=1, bias=0 at init
    bn_g = jnp.ones((embed_size,), jnp.float32)
    bn_b = jnp.zeros((embed_size,), jnp.float32)

    out = encoder_cnn_forward(images, resnet_params, fc_w, fc_b, bn_g, bn_b)
    out = jax.block_until_ready(out)

    assert out.shape == (2, embed_size), out.shape
    assert bool(jnp.all(jnp.isfinite(out)))
    print("KERNEL_OK")
</pallas_src>

<mosaic_0001>
module attributes {stable_mosaic.version = 11 : i64} {
  func.func @_matmul_epilogue_kernel(%arg0: i32, %arg1: i32, %arg2: memref<256x147xbf16, #tpu.memory_space<vmem>>, %arg3: memref<147x64xbf16, #tpu.memory_space<vmem>>, %arg4: memref<1x64xf32, #tpu.memory_space<vmem>>, %arg5: memref<1x64xf32, #tpu.memory_space<vmem>>, %arg6: memref<256x64xbf16, #tpu.memory_space<vmem>>) attributes {dimension_semantics = [#tpu.dimension_semantics<parallel>, #tpu.dimension_semantics<parallel>], iteration_bounds = array<i64: 8, 1>, scalar_prefetch = 0 : i64, scratch_operands = 0 : i64, tpu.core_type = #tpu.core_type<tc>, window_params = [{transform_indices = @transform_0, window_bounds = array<i64: 256, 147>}, {transform_indices = @transform_1, window_bounds = array<i64: 147, 64>}, {transform_indices = @transform_2, window_bounds = array<i64: 1, 64>}, {transform_indices = @transform_3, window_bounds = array<i64: 1, 64>}, {transform_indices = @transform_4, window_bounds = array<i64: 256, 64>}]} {
    %c0 = arith.constant 0 : index
    %c0_0 = arith.constant 0 : index
    %0 = vector.load %arg2[%c0, %c0_0] : memref<256x147xbf16, #tpu.memory_space<vmem>>, vector<256x147xbf16>
    %c0_1 = arith.constant 0 : index
    %c0_2 = arith.constant 0 : index
    %1 = vector.load %arg3[%c0_1, %c0_2] : memref<147x64xbf16, #tpu.memory_space<vmem>>, vector<147x64xbf16>
    %cst = arith.constant dense<0.000000e+00> : vector<256x64xf32>
    %2 = tpu.matmul %0, %1, %cst {dimension_numbers = #tpu.dot_dimension_numbers<[1], [0], [0], [1], [0, 0, 1, 1], [], []>} : vector<256x147xbf16>, vector<147x64xbf16>, vector<256x64xf32> -> vector<256x64xf32>
    %c0_3 = arith.constant 0 : index
    %c0_4 = arith.constant 0 : index
    %3 = vector.load %arg4[%c0_3, %c0_4] : memref<1x64xf32, #tpu.memory_space<vmem>>, vector<1x64xf32>
    %4 = vector.broadcast %3 : vector<1x64xf32> to vector<256x64xf32>
    %5 = arith.mulf %2, %4 : vector<256x64xf32>
    %c0_5 = arith.constant 0 : index
    %c0_6 = arith.constant 0 : index
    %6 = vector.load %arg5[%c0_5, %c0_6] : memref<1x64xf32, #tpu.memory_space<vmem>>, vector<1x64xf32>
    %7 = vector.broadcast %6 : vector<1x64xf32> to vector<256x64xf32>
    %8 = arith.addf %5, %7 : vector<256x64xf32>
    %cst_7 = arith.constant 0.000000e+00 : f32
    %9 = vector.broadcast %cst_7 : f32 to vector<256x64xf32>
    %10 = arith.maximumf %8, %9 : vector<256x64xf32>
    %11 = arith.truncf %10 : vector<256x64xf32> to vector<256x64xbf16>
    %c0_8 = arith.constant 0 : index
    %c0_9 = arith.constant 0 : index
    %12 = vector.load %arg6[%c0_8, %c0_9] : memref<256x64xbf16, #tpu.memory_space<vmem>>, vector<256x64xbf16>
    tpu.vector_store %arg6[%c0_8, %c0_9], %11 {strides = array<i32>} : memref<256x64xbf16, #tpu.memory_space<vmem>>, vector<256x64xbf16>,
    return
  }
  func.func @transform_0(%arg0: i32, %arg1: i32) -> (i32, i32) {
    %c0_i32 = arith.constant 0 : i32
    %c0_i32_0 = arith.constant 0 : i32
    return %arg0, %c0_i32 : i32, i32
  }
  func.func @transform_1(%arg0: i32, %arg1: i32) -> (i32, i32) {
    %c0_i32 = arith.constant 0 : i32
    %c0_i32_0 = arith.constant 0 : i32
    return %c0_i32, %arg1 : i32, i32
  }
  func.func @transform_2(%arg0: i32, %arg1: i32) -> (i32, i32) {
    %c0_i32 = arith.constant 0 : i32
    %c0_i32_0 = arith.constant 0 : i32
    return %c0_i32, %arg1 : i32, i32
  }
  func.func @transform_3(%arg0: i32, %arg1: i32) -> (i32, i32) {
    %c0_i32 = arith.constant 0 : i32
    %c0_i32_0 = arith.constant 0 : i32
    return %c0_i32, %arg1 : i32, i32
  }
  func.func @transform_4(%arg0: i32, %arg1: i32) -> (i32, i32) {
    %c0_i32 = arith.constant 0 : i32
    return %arg0, %arg1 : i32, i32
  }
}

</mosaic_0001>

<bundles_post_ra>
// kernel: tpu_custom_call.1
= control target key start
LH: loop header
LB: loop body
LE: loop exit
PB: predicated region body
PF: predicated region fallthrough
CT: control target
= control target key end

     0   :  { %s1419_s15 = smov 0   ;;  %s1421_s16 = smov 0   ;;  %s1676_s0 = inlined_call_operand.vmem [shape: bf16[2048,147], index: 0, kind: input, shape index: {}]   ;;  %s1677_s1 = inlined_call_operand.vmem [shape: bf16[147,64], index: 1, kind: input, shape index: {}]   ;;  %s1678_s2 = inlined_call_operand.vmem [shape: f32[1,64], index: 2, kind: input, shape index: {}]   ;;  %s1679_s3 = inlined_call_operand.vmem [shape: f32[1,64], index: 3, kind: input, shape index: {}]   ;;  %s1680_s4 = inlined_call_operand.vmem [shape: bf16[2048,64], index: 4, kind: output, shape index: {}]  }
   0x1   :  { %s1423_s17 = smov 0  }
   0x2 LB: > { %s26_s18 = sadd.s32 1, %s1386_s16  ;;  %p1131_p0 = scmp.ge.s32.totalorder %s1390_s17, 1  ;;  %s1390_s17 = sphi %s1423_s17, %s14_s17   ;;  %s1386_s16 = sphi %s1421_s16, %s1682_s16   ;;  %s1382_s15 = sphi %s1419_s15, %s1681_s15  }
   0x3   : > { %p28_p1 = scmp.ge.s32.totalorder %s26_s18, 8  ;;  %p203_p2 = scmp.lt.s32.totalorder %s1390_s17, 9 }
   0x5   : > { %s1684_s18 = smov (%p28_p1, %s26_s18), 0  ;;  %p204_p3 = pnand %p1131_p0, %p203_p2 }
   0x6   : > { %v1310_v0 = vld [vmem:[%s1677_s1] sm:$0xff] (!%p204_p3)   ;;  %v1392_v1 = vmov (!%p204_p3), 0   ;;  %v1311_v2 = vld [vmem:[%s1677_s1 + $0x8] sm:$0xff] (!%p204_p3)   ;;  %v1312_v3 = vld [vmem:[%s1677_s1 + $0x10] sm:$0xff] (!%p204_p3)   ;;  %s1132_s25 = sshll.u32 (!%p204_p3), %s1382_s15, 5  ;;  %vm522_vm0 = vcmask (!%p204_p3), 154624  }
   0x7   : > { %207 = sbr.rel (%p204_p3) target bundleno = 326 (0x146), region = 36  ;;  %578 = vmatprep.subr.bf16.mxu0 (!%p204_p3), %v1392_v1  ;;  %1264 = vmatprep.subr.bf16.mxu1 (!%p204_p3), %v1392_v1  ;;  %p244_p4 = scmp.lt.s32.totalorder (!%p204_p3), %s1132_s25, 255  ;;  %v1313_v4 = vld [vmem:[%s1677_s1 + $0x18] sm:$0xff] (!%p204_p3)   ;;  %v1314_v5 = vld [vmem:[%s1677_s1 + $0x20] sm:$0xff] (!%p204_p3)   ;;  %v1315_v8 = vld [vmem:[%s1677_s1 + $0x28] sm:$0xff] (!%p204_p3)   ;;  %vm571_vm1 = vcmask (!%p204_p3), 1040384  }
   0x8   : > { %579 = vmatpush1.bf16.msra.mxu0 (!%p204_p3), %v1310_v0  ;;  %1274 = vmatpush1.bf16.msra.mxu1 (!%p204_p3), %v1310_v0  ;;  %v1316_v9 = vld [vmem:[%s1677_s1 + $0x30] sm:$0xff] (!%p204_p3)   ;;  %v1317_v10 = vld [vmem:[%s1677_s1 + $0x38] sm:$0xff] (!%p204_p3)   ;;  %vm572_vm2 = vcmask (!%p204_p3), 1041408   ;;  %v1393_v11 = vmov (!%p204_p3), 65535   ;;  %v1318_v13 = vld [vmem:[%s1677_s1 + $0x40] sm:$0xff] (!%p204_p3)   ;;  %vm977_vm3 = vcmask (!%p204_p3), 519168  }
   0x9   : > { %580 = vmatprep.subr.bf16.mxu0 (!%p204_p3), %v1392_v1  ;;  %1265 = vmatprep.subr.bf16.mxu1 (!%p204_p3), %v1392_v1  ;;  %v573_v12 = vsel (!%p204_p3), %vm571_vm1, 4294967295, %v1393_v11  ;;  %v1319_v14 = vld [vmem:[%s1677_s1 + $0x48] ss:$0 sps:$4 sm:$0x33] (!%p204_p3)   ;;  %v1526_v47 = vld [vmem:[%s1678_s2] ss:$0 sm:$0xff] (!%p204_p3) }
   0xa   : > { %v574_v15 = vsel (!%p204_p3), %vm572_vm2, %v573_v12, 0  ;;  %v1531_v49 = vld [vmem:[%s1679_s3] ss:$0 sm:$0xff] (!%p204_p3) }
   0xb   : > { %v576_v16 = vand.u32 (!%p204_p3), %v1319_v14, %v574_v15 }
   0xc   : > { %581 = vmatpush1.bf16.msra.mxu0 (!%p204_p3), %v1311_v2  ;;  %1275 = vmatpush1.bf16.msra.mxu1 (!%p204_p3), %v1311_v2 }
   0xd   : > { %582 = vmatprep.subr.bf16.mxu0 (!%p204_p3), %v1392_v1  ;;  %1266 = vmatprep.subr.bf16.mxu1 (!%p204_p3), %v1392_v1 }
   0xe   : > { %s1686_s25 = smov (!%p244_p4, %s1132_s25), 255 }
   0xf   : > { %s1231_s28 = sshll.u32 %s1686_s25, 3  ;;  %s1136_s26 = sshll.u32 %s1686_s25, 2 }
  0x10   : > { %583 = vmatpush1.bf16.msra.mxu0 %v1312_v3  ;;  %1276 = vmatpush1.bf16.msra.mxu1 %v1312_v3  ;;  %s1455_s5 = scalar_lea.vmem %s1676_s0, %s1231_s28  ;;  %s1545_s25 = scalar_lea.vmem %s1680_s4, %s1136_s26 }
  0x11   : > { %584 = vmatprep.subr.bf16.mxu0 %v1392_v1  ;;  %1267 = vmatprep.subr.bf16.mxu1 %v1392_v1  ;;  %v1322_v6 = vld [vmem:[%s1455_s5 + $0x4] ss:$8 sps:$4 sm:$0xff]   ;;  %v1320_v17 = vld [vmem:[%s1455_s5] ss:$8 sps:$4 sm:$0xff]   ;;  %v1326_v19 = vld [vmem:[%s1455_s5 + $0x14] ss:$8 sps:$4 sm:$0xff]  }
  0x12   : > { %v1325_v7 = vld [vmem:[%s1455_s5 + $0x84] ss:$8 sps:$4 sm:$0xff]   ;;  %1179 = vmatprep.mubr.msk.bf16.mxu0 %vm522_vm0, %v1322_v6  ;;  %v1323_v18 = vld [vmem:[%s1455_s5 + $0x80] ss:$8 sps:$4 sm:$0xff]   ;;  %v1328_v20 = vld [vmem:[%s1455_s5 + $0x94] ss:$8 sps:$4 sm:$0xff]  }
  0x13   : > { %1187 = vmatprep.mubr.msk.bf16.mxu1 %vm522_vm0, %v1325_v7  ;;  %v1330_v21 = vld [vmem:[%s1455_s5 + $0x10] ss:$8 sps:$4 sm:$0xff]   ;;  %v1332_v23 = vld [vmem:[%s1455_s5 + $0x24] ss:$8 sps:$4 sm:$0xff]   ;;  %v1336_v25 = vld [vmem:[%s1455_s5 + $0x20] ss:$8 sps:$4 sm:$0xff]  }
  0x14   : > { %585 = vmatpush1.bf16.msra.mxu0 %v1313_v4  ;;  %1277 = vmatpush1.bf16.msra.mxu1 %v1313_v4  ;;  %v1331_v22 = vld [vmem:[%s1455_s5 + $0x90] ss:$8 sps:$4 sm:$0xff]   ;;  %v1334_v24 = vld [vmem:[%s1455_s5 + $0xa4] ss:$8 sps:$4 sm:$0xff]   ;;  %v1337_v26 = vld [vmem:[%s1455_s5 + $0xa0] ss:$8 sps:$4 sm:$0xff]  }
  0x15   : > { %586 = vmatprep.subr.bf16.mxu0 %v1392_v1  ;;  %1268 = vmatprep.subr.bf16.mxu1 %v1392_v1  ;;  %v1338_v27 = vld [vmem:[%s1455_s5 + $0x34] ss:$8 sps:$4 sm:$0xff]   ;;  %v1342_v29 = vld [vmem:[%s1455_s5 + $0x30] ss:$8 sps:$4 sm:$0xff]   ;;  %v1344_v31 = vld [vmem:[%s1455_s5 + $0x44] ss:$8 sps:$4 sm:$0xff]  }
  0x16   : > { %v1340_v28 = vld [vmem:[%s1455_s5 + $0xb4] ss:$8 sps:$4 sm:$0xff]   ;;  %v1343_v30 = vld [vmem:[%s1455_s5 + $0xb0] ss:$8 sps:$4 sm:$0xff]   ;;  %v1346_v32 = vld [vmem:[%s1455_s5 + $0xc4] ss:$8 sps:$4 sm:$0xff]  }
  0x17   : > { %v1348_v33 = vld [vmem:[%s1455_s5 + $0x40] ss:$8 sps:$4 sm:$0xff]   ;;  %v1350_v35 = vld [vmem:[%s1455_s5 + $0x54] ss:$8 sps:$4 sm:$0xff]   ;;  %v1354_v37 = vld [vmem:[%s1455_s5 + $0x50] ss:$8 sps:$4 sm:$0xff]  }
  0x18   : > { %587 = vmatpush1.bf16.msra.mxu0 %v1314_v5  ;;  %1278 = vmatpush1.bf16.msra.mxu1 %v1314_v5  ;;  %v1349_v34 = vld [vmem:[%s1455_s5 + $0xc0] ss:$8 sps:$4 sm:$0xff]   ;;  %v1352_v36 = vld [vmem:[%s1455_s5 + $0xd4] ss:$8 sps:$4 sm:$0xff]   ;;  %v1355_v38 = vld [vmem:[%s1455_s5 + $0xd0] ss:$8 sps:$4 sm:$0xff]  }
  0x19   : > { %588 = vmatprep.subr.bf16.mxu0 %v1392_v1  ;;  %1269 = vmatprep.subr.bf16.mxu1 %v1392_v1  ;;  %v1356_v39 = vld [vmem:[%s1455_s5 + $0x64] ss:$8 sps:$4 sm:$0xff]   ;;  %v1360_v41 = vld [vmem:[%s1455_s5 + $0x60] ss:$8 sps:$4 sm:$0xff]   ;;  %v1362_v43 = vld [vmem:[%s1455_s5 + $0x74] ss:$8 sps:$4 sm:$0xff]  }
  0x1a   : > { %v1358_v40 = vld [vmem:[%s1455_s5 + $0xe4] ss:$8 sps:$4 sm:$0xff]   ;;  %v1361_v42 = vld [vmem:[%s1455_s5 + $0xe0] ss:$8 sps:$4 sm:$0xff]   ;;  %v1364_v44 = vld [vmem:[%s1455_s5 + $0xf4] ss:$8 sps:$4 sm:$0xff]  }
  0x1b   : > { %v1366_v45 = vld [vmem:[%s1455_s5 + $0x70] ss:$8 sps:$4 sm:$0xff]  }
  0x1c   : > { %589 = vmatpush1.bf16.msra.mxu0 %v1315_v8  ;;  %1279 = vmatpush1.bf16.msra.mxu1 %v1315_v8  ;;  %v1367_v46 = vld [vmem:[%s1455_s5 + $0xf0] ss:$8 sps:$4 sm:$0xff]  }
  0x1d   : > { %590 = vmatprep.subr.bf16.mxu0 %v1392_v1  ;;  %1270 = vmatprep.subr.bf16.mxu1 %v1392_v1 }
  0x20   : > { %591 = vmatpush1.bf16.msra.mxu0 %v1316_v9  ;;  %1280 = vmatpush1.bf16.msra.mxu1 %v1316_v9 }
  0x21   : > { %592 = vmatprep.subr.bf16.mxu0 %v1392_v1  ;;  %1271 = vmatprep.subr.bf16.mxu1 %v1392_v1 }
  0x24   : > { %593 = vmatpush1.bf16.msra.mxu0 %v1317_v10  ;;  %1281 = vmatpush1.bf16.msra.mxu1 %v1317_v10 }
  0x25   : > { %594 = vmatprep.subr.bf16.mxu0 %v1392_v1  ;;  %1272 = vmatprep.subr.bf16.mxu1 %v1392_v1 }
  0x28   : > { %595 = vmatpush1.bf16.msra.mxu0 %v1318_v13  ;;  %1282 = vmatpush1.bf16.msra.mxu1 %v1318_v13 }
  0x29   : > { %596 = vmatprep.subr.bf16.mxu0 %v1392_v1  ;;  %1273 = vmatprep.subr.bf16.mxu1 %v1392_v1 }
  0x2c   : > { %597 = vmatpush1.bf16.msra.mxu0 %v576_v16  ;;  %1283 = vmatpush1.bf16.msra.mxu1 %v576_v16 }
  0x2f   : > { %611 = vmatmul.mubr.bf16.vlgmr.msra.gmra.mrb[0].mxu0 %v1320_v17  ;;  %675 = vmatmul.mubr.bf16.vlgmr.msra.gmra.mrb[0].mxu1 %v1323_v18 }
  0x30   : > { %1180 = vmatprep.mubr.msk.bf16.mxu0 %vm522_vm0, %v1326_v19  ;;  %1188 = vmatprep.mubr.msk.bf16.mxu1 %vm522_vm0, %v1328_v20 }
  0x37   : > { %619 = vmatmul.mubr.bf16.gmra.mrb[4].mxu0 %v1330_v21  ;;  %683 = vmatmul.mubr.bf16.gmra.mrb[4].mxu1 %v1331_v22 }
  0x38   : > { %1181 = vmatprep.mubr.msk.bf16.mxu0 %vm522_vm0, %v1332_v23  ;;  %1189 = vmatprep.mubr.msk.bf16.mxu1 %vm522_vm0, %v1334_v24 }
  0x3f   : > { %627 = vmatmul.mubr.bf16.gmra.mrb[8].mxu0 %v1336_v25  ;;  %691 = vmatmul.mubr.bf16.gmra.mrb[8].mxu1 %v1337_v26 }
  0x40   : > { %1182 = vmatprep.mubr.msk.bf16.mxu0 %vm522_vm0, %v1338_v27  ;;  %1190 = vmatprep.mubr.msk.bf16.mxu1 %vm522_vm0, %v1340_v28 }
  0x47   : > { %635 = vmatmul.mubr.bf16.gmra.mrb[12].mxu0 %v1342_v29  ;;  %699 = vmatmul.mubr.bf16.gmra.mrb[12].mxu1 %v1343_v30 }
  0x48   : > { %1183 = vmatprep.mubr.msk.bf16.mxu0 %vm522_vm0, %v1344_v31  ;;  %1191 = vmatprep.mubr.msk.bf16.mxu1 %vm522_vm0, %v1346_v32 }
  0x4f   : > { %643 = vmatmul.mubr.bf16.gmra.mrb[16].mxu0 %v1348_v33  ;;  %707 = vmatmul.mubr.bf16.gmra.mrb[16].mxu1 %v1349_v34 }
  0x50   : > { %1184 = vmatprep.mubr.msk.bf16.mxu0 %vm522_vm0, %v1350_v35  ;;  %1192 = vmatprep.mubr.msk.bf16.mxu1 %vm522_vm0, %v1352_v36 }
  0x57   : > { %651 = vmatmul.mubr.bf16.gmra.mrb[20].mxu0 %v1354_v37  ;;  %715 = vmatmul.mubr.bf16.gmra.mrb[20].mxu1 %v1355_v38 }
  0x58   : > { %1185 = vmatprep.mubr.msk.bf16.mxu0 %vm522_vm0, %v1356_v39  ;;  %1193 = vmatprep.mubr.msk.bf16.mxu1 %vm522_vm0, %v1358_v40 }
  0x5f   : > { %659 = vmatmul.mubr.bf16.gmra.mrb[24].mxu0 %v1360_v41  ;;  %723 = vmatmul.mubr.bf16.gmra.mrb[24].mxu1 %v1361_v42 }
  0x60   : > { %1186 = vmatprep.mubr.msk.bf16.mxu0 %vm522_vm0, %v1362_v43  ;;  %1194 = vmatprep.mubr.msk.bf16.mxu1 %vm522_vm0, %v1364_v44 }
  0x67   : > { %667 = vmatmul.mubr.bf16.gmra.mrb[28].mxu0 %v1366_v45  ;;  %731 = vmatmul.mubr.bf16.gmra.mrb[28].mxu1 %v1367_v46 }
 0x102   : > { %v612_v48 = vpop.f32.mrb[0].mxu0  ;;  %v676_v50 = vpop.f32.mrb[0].mxu1 }
 0x103   : > { %v746_v51 = vmul.f32 %v1526_v47, %v612_v48  ;;  %v762_v52 = vmul.f32 %v1526_v47, %v676_v50  ;;  %v614_v53 = vpop.f32.mrb[1].mxu0  ;;  %v678_v54 = vpop.f32.mrb[1].mxu1 }
 0x104   : > { %v615_v55 = vpop.f32.mrb[2].mxu0  ;;  %v679_v56 = vpop.f32.mrb[2].mxu1 }
 0x105   : > { %v785_v57 = vadd.f32 %v1531_v49, %v746_v51  ;;  %v801_v58 = vadd.f32 %v1531_v49, %v762_v52  ;;  %v747_v59 = vmul.f32 %v1526_v47, %v615_v55  ;;  %v763_v60 = vmul.f32 %v1526_v47, %v679_v56  ;;  %v617_v61 = vpop.f32.mrb[3].mxu0  ;;  %v681_v62 = vpop.f32.mrb[3].mxu1 }
 0x107   : > { %v817_v63 = vmax.f32 %v785_v57, 0.0  ;;  %v833_v0 = vmax.f32 %v801_v58, 0.0  ;;  %v786_v1 = vadd.f32 %v1531_v49, %v747_v59  ;;  %v802_v2 = vadd.f32 %v1531_v49, %v763_v60 }
 0x109   : > { %v1232_v3 = vpack.c.bf16 %v817_v63, %v817_v63  ;;  %v1248_v4 = vpack.c.bf16 %v833_v0, %v833_v0  ;;  %v818_v5 = vmax.f32 %v786_v1, 0.0  ;;  %v834_v6 = vmax.f32 %v802_v2, 0.0 }
 0x10a   : > { %v620_v7 = vpop.f32.mrb[4].mxu0  ;;  %v684_v8 = vpop.f32.mrb[4].mxu1 }
 0x10b   : > { %978 = vst.msk [vmem:[%s1545_s25] sm:$0xf] %vm977_vm3, %v1232_v3  ;;  %994 = vst.msk [vmem:[%s1545_s25 + $0x40] sm:$0xf] %vm977_vm3, %v1248_v4  ;;  %v1233_v9 = vpack.c.bf16 %v818_v5, %v818_v5  ;;  %v1249_v10 = vpack.c.bf16 %v834_v6, %v834_v6  ;;  %v748_v11 = vmul.f32 %v1526_v47, %v620_v7  ;;  %v622_v13 = vpop.f32.mrb[5].mxu0  ;;  %v686_v14 = vpop.f32.mrb[5].mxu1 }
 0x10c   : > { %v764_v12 = vmul.f32 %v1526_v47, %v684_v8  ;;  %v623_v15 = vpop.f32.mrb[6].mxu0  ;;  %v687_v16 = vpop.f32.mrb[6].mxu1 }
 0x10d   : > { %979 = vst.msk [vmem:[%s1545_s25 + $0x4] sm:$0xf] %vm977_vm3, %v1233_v9  ;;  %995 = vst.msk [vmem:[%s1545_s25 + $0x44] sm:$0xf] %vm977_vm3, %v1249_v10  ;;  %v787_v17 = vadd.f32 %v1531_v49, %v748_v11  ;;  %v749_v19 = vmul.f32 %v1526_v47, %v623_v15  ;;  %v765_v20 = vmul.f32 %v1526_v47, %v687_v16  ;;  %v625_v21 = vpop.f32.mrb[7].mxu0  ;;  %v689_v22 = vpop.f32.mrb[7].mxu1 }
 0x10e   : > { %v803_v18 = vadd.f32 %v1531_v49, %v764_v12 }
 0x10f   : > { %v819_v23 = vmax.f32 %v787_v17, 0.0  ;;  %v788_v25 = vadd.f32 %v1531_v49, %v749_v19  ;;  %v804_v26 = vadd.f32 %v1531_v49, %v765_v20 }
 0x110   : > { %v835_v24 = vmax.f32 %v803_v18, 0.0 }
 0x111   : > { %v1234_v27 = vpack.c.bf16 %v819_v23, %v819_v23  ;;  %v820_v29 = vmax.f32 %v788_v25, 0.0  ;;  %v836_v30 = vmax.f32 %v804_v26, 0.0 }
 0x112   : > { %v1250_v28 = vpack.c.bf16 %v835_v24, %v835_v24  ;;  %v628_v31 = vpop.f32.mrb[8].mxu0  ;;  %v692_v32 = vpop.f32.mrb[8].mxu1 }
 0x113   : > { %980 = vst.msk [vmem:[%s1545_s25 + $0x8] sm:$0xf] %vm977_vm3, %v1234_v27  ;;  %v1235_v33 = vpack.c.bf16 %v820_v29, %v820_v29  ;;  %v1251_v34 = vpack.c.bf16 %v836_v30, %v836_v30  ;;  %v750_v35 = vmul.f32 %v1526_v47, %v628_v31  ;;  %v766_v36 = vmul.f32 %v1526_v47, %v692_v32  ;;  %v630_v37 = vpop.f32.mrb[9].mxu0  ;;  %v694_v38 = vpop.f32.mrb[9].mxu1 }
 0x114   : > { %996 = vst.msk [vmem:[%s1545_s25 + $0x48] sm:$0xf] %vm977_vm3, %v1250_v28  ;;  %v631_v39 = vpop.f32.mrb[10].mxu0  ;;  %v695_v40 = vpop.f32.mrb[10].mxu1 }
 0x115   : > { %981 = vst.msk [vmem:[%s1545_s25 + $0xc] sm:$0xf] %vm977_vm3, %v1235_v33  ;;  %997 = vst.msk [vmem:[%s1545_s25 + $0x4c] sm:$0xf] %vm977_vm3, %v1251_v34  ;;  %v789_v41 = vadd.f32 %v1531_v49, %v750_v35  ;;  %v805_v42 = vadd.f32 %v1531_v49, %v766_v36  ;;  %v751_v43 = vmul.f32 %v1526_v47, %v631_v39  ;;  %v633_v45 = vpop.f32.mrb[11].mxu0  ;;  %v697_v46 = vpop.f32.mrb[11].mxu1 }
 0x116   : > { %v767_v44 = vmul.f32 %v1526_v47, %v695_v40 }
 0x117   : > { %v821_v48 = vmax.f32 %v789_v41, 0.0  ;;  %v837_v50 = vmax.f32 %v805_v42, 0.0  ;;  %v790_v51 = vadd.f32 %v1531_v49, %v751_v43 }
 0x118   : > { %v806_v52 = vadd.f32 %v1531_v49, %v767_v44 }
 0x119   : > { %v1236_v53 = vpack.c.bf16 %v821_v48, %v821_v48  ;;  %v1252_v54 = vpack.c.bf16 %v837_v50, %v837_v50  ;;  %v822_v55 = vmax.f32 %v790_v51, 0.0 }
 0x11a   : > { %v838_v56 = vmax.f32 %v806_v52, 0.0  ;;  %v636_v57 = vpop.f32.mrb[12].mxu0  ;;  %v700_v58 = vpop.f32.mrb[12].mxu1 }
 0x11b   : > { %982 = vst.msk [vmem:[%s1545_s25 + $0x10] sm:$0xf] %vm977_vm3, %v1236_v53  ;;  %998 = vst.msk [vmem:[%s1545_s25 + $0x50] sm:$0xf] %vm977_vm3, %v1252_v54  ;;  %v1237_v59 = vpack.c.bf16 %v822_v55, %v822_v55  ;;  %v752_v61 = vmul.f32 %v1526_v47, %v636_v57  ;;  %v768_v62 = vmul.f32 %v1526_v47, %v700_v58  ;;  %v638_v63 = vpop.f32.mrb[13].mxu0  ;;  %v702_v0 = vpop.f32.mrb[13].mxu1 }
 0x11c   : > { %v1253_v60 = vpack.c.bf16 %v838_v56, %v838_v56  ;;  %v639_v1 = vpop.f32.mrb[14].mxu0  ;;  %v703_v2 = vpop.f32.mrb[14].mxu1 }
 0x11d   : > { %983 = vst.msk [vmem:[%s1545_s25 + $0x14] sm:$0xf] %vm977_vm3, %v1237_v59  ;;  %v791_v3 = vadd.f32 %v1531_v49, %v752_v61  ;;  %v807_v4 = vadd.f32 %v1531_v49, %v768_v62  ;;  %v753_v5 = vmul.f32 %v1526_v47, %v639_v1  ;;  %v769_v6 = vmul.f32 %v1526_v47, %v703_v2  ;;  %v641_v7 = vpop.f32.mrb[15].mxu0  ;;  %v705_v8 = vpop.f32.mrb[15].mxu1 }
 0x11e   : > { %999 = vst.msk [vmem:[%s1545_s25 + $0x54] sm:$0xf] %vm977_vm3, %v1253_v60 }
 0x11f   : > { %v823_v9 = vmax.f32 %v791_v3, 0.0  ;;  %v839_v10 = vmax.f32 %v807_v4, 0.0  ;;  %v792_v11 = vadd.f32 %v1531_v49, %v753_v5  ;;  %v808_v12 = vadd.f32 %v1531_v49, %v769_v6 }
 0x121   : > { %v1238_v13 = vpack.c.bf16 %v823_v9, %v823_v9  ;;  %v1254_v14 = vpack.c.bf16 %v839_v10, %v839_v10  ;;  %v824_v15 = vmax.f32 %v792_v11, 0.0  ;;  %v840_v16 = vmax.f32 %v808_v12, 0.0 }
 0x122   : > { %v644_v17 = vpop.f32.mrb[16].mxu0  ;;  %v708_v18 = vpop.f32.mrb[16].mxu1 }
 0x123   : > { %984 = vst.msk [vmem:[%s1545_s25 + $0x18] sm:$0xf] %vm977_vm3, %v1238_v13  ;;  %1000 = vst.msk [vmem:[%s1545_s25 + $0x58] sm:$0xf] %vm977_vm3, %v1254_v14  ;;  %v1239_v19 = vpack.c.bf16 %v824_v15, %v824_v15  ;;  %v1255_v20 = vpack.c.bf16 %v840_v16, %v840_v16  ;;  %v754_v21 = vmul.f32 %v1526_v47, %v644_v17  ;;  %v646_v23 = vpop.f32.mrb[17].mxu0  ;;  %v710_v24 = vpop.f32.mrb[17].mxu1 }
 0x124   : > { %v770_v22 = vmul.f32 %v1526_v47, %v708_v18  ;;  %v647_v25 = vpop.f32.mrb[18].mxu0  ;;  %v711_v26 = vpop.f32.mrb[18].mxu1 }
 0x125   : > { %985 = vst.msk [vmem:[%s1545_s25 + $0x1c] sm:$0xf] %vm977_vm3, %v1239_v19  ;;  %1001 = vst.msk [vmem:[%s1545_s25 + $0x5c] sm:$0xf] %vm977_vm3, %v1255_v20  ;;  %v793_v27 = vadd.f32 %v1531_v49, %v754_v21  ;;  %v755_v29 = vmul.f32 %v1526_v47, %v647_v25  ;;  %v771_v30 = vmul.f32 %v1526_v47, %v711_v26  ;;  %v649_v31 = vpop.f32.mrb[19].mxu0  ;;  %v713_v32 = vpop.f32.mrb[19].mxu1 }
 0x126   : > { %v809_v28 = vadd.f32 %v1531_v49, %v770_v22 }
 0x127   : > { %v825_v33 = vmax.f32 %v793_v27, 0.0  ;;  %v794_v35 = vadd.f32 %v1531_v49, %v755_v29  ;;  %v810_v36 = vadd.f32 %v1531_v49, %v771_v30 }
 0x128   : > { %v841_v34 = vmax.f32 %v809_v28, 0.0 }
 0x129   : > { %v1240_v37 = vpack.c.bf16 %v825_v33, %v825_v33  ;;  %v826_v39 = vmax.f32 %v794_v35, 0.0  ;;  %v842_v40 = vmax.f32 %v810_v36, 0.0 }
 0x12a   : > { %v1256_v38 = vpack.c.bf16 %v841_v34, %v841_v34  ;;  %v652_v41 = vpop.f32.mrb[20].mxu0  ;;  %v716_v42 = vpop.f32.mrb[20].mxu1 }
 0x12b   : > { %986 = vst.msk [vmem:[%s1545_s25 + $0x20] sm:$0xf] %vm977_vm3, %v1240_v37  ;;  %v1241_v43 = vpack.c.bf16 %v826_v39, %v826_v39  ;;  %v1257_v44 = vpack.c.bf16 %v842_v40, %v842_v40  ;;  %v756_v45 = vmul.f32 %v1526_v47, %v652_v41  ;;  %v772_v46 = vmul.f32 %v1526_v47, %v716_v42  ;;  %v654_v48 = vpop.f32.mrb[21].mxu0  ;;  %v718_v50 = vpop.f32.mrb[21].mxu1 }
 0x12c   : > { %1002 = vst.msk [vmem:[%s1545_s25 + $0x60] sm:$0xf] %vm977_vm3, %v1256_v38  ;;  %v655_v51 = vpop.f32.mrb[22].mxu0  ;;  %v719_v52 = vpop.f32.mrb[22].mxu1 }
 0x12d   : > { %987 = vst.msk [vmem:[%s1545_s25 + $0x24] sm:$0xf] %vm977_vm3, %v1241_v43  ;;  %1003 = vst.msk [vmem:[%s1545_s25 + $0x64] sm:$0xf] %vm977_vm3, %v1257_v44  ;;  %v795_v53 = vadd.f32 %v1531_v49, %v756_v45  ;;  %v811_v54 = vadd.f32 %v1531_v49, %v772_v46  ;;  %v757_v55 = vmul.f32 %v1526_v47, %v655_v51  ;;  %v657_v57 = vpop.f32.mrb[23].mxu0  ;;  %v721_v58 = vpop.f32.mrb[23].mxu1 }
 0x12e   : > { %v773_v56 = vmul.f32 %v1526_v47, %v719_v52 }
 0x12f   : > { %v827_v59 = vmax.f32 %v795_v53, 0.0  ;;  %v843_v60 = vmax.f32 %v811_v54, 0.0  ;;  %v796_v61 = vadd.f32 %v1531_v49, %v757_v55 }
 0x130   : > { %v812_v62 = vadd.f32 %v1531_v49, %v773_v56 }
 0x131   : > { %v1242_v63 = vpack.c.bf16 %v827_v59, %v827_v59  ;;  %v1258_v0 = vpack.c.bf16 %v843_v60, %v843_v60  ;;  %v828_v1 = vmax.f32 %v796_v61, 0.0 }
 0x132   : > { %v844_v2 = vmax.f32 %v812_v62, 0.0  ;;  %v660_v3 = vpop.f32.mrb[24].mxu0  ;;  %v724_v4 = vpop.f32.mrb[24].mxu1 }
 0x133   : > { %988 = vst.msk [vmem:[%s1545_s25 + $0x28] sm:$0xf] %vm977_vm3, %v1242_v63  ;;  %1004 = vst.msk [vmem:[%s1545_s25 + $0x68] sm:$0xf] %vm977_vm3, %v1258_v0  ;;  %v1243_v5 = vpack.c.bf16 %v828_v1, %v828_v1  ;;  %v758_v7 = vmul.f32 %v1526_v47, %v660_v3  ;;  %v774_v8 = vmul.f32 %v1526_v47, %v724_v4  ;;  %v662_v9 = vpop.f32.mrb[25].mxu0  ;;  %v726_v10 = vpop.f32.mrb[25].mxu1 }
 0x134   : > { %v1259_v6 = vpack.c.bf16 %v844_v2, %v844_v2  ;;  %v663_v11 = vpop.f32.mrb[26].mxu0  ;;  %v727_v12 = vpop.f32.mrb[26].mxu1 }
 0x135   : > { %989 = vst.msk [vmem:[%s1545_s25 + $0x2c] sm:$0xf] %vm977_vm3, %v1243_v5  ;;  %v797_v13 = vadd.f32 %v1531_v49, %v758_v7  ;;  %v813_v14 = vadd.f32 %v1531_v49, %v774_v8  ;;  %v759_v15 = vmul.f32 %v1526_v47, %v663_v11  ;;  %v775_v16 = vmul.f32 %v1526_v47, %v727_v12  ;;  %v665_v17 = vpop.f32.mrb[27].mxu0  ;;  %v729_v18 = vpop.f32.mrb[27].mxu1 }
 0x136   : > { %1005 = vst.msk [vmem:[%s1545_s25 + $0x6c] sm:$0xf] %vm977_vm3, %v1259_v6 }
 0x137   : > { %v829_v19 = vmax.f32 %v797_v13, 0.0  ;;  %v845_v20 = vmax.f32 %v813_v14, 0.0  ;;  %v798_v21 = vadd.f32 %v1531_v49, %v759_v15  ;;  %v814_v22 = vadd.f32 %v1531_v49, %v775_v16 }
 0x139   : > { %v1244_v23 = vpack.c.bf16 %v829_v19, %v829_v19  ;;  %v1260_v24 = vpack.c.bf16 %v845_v20, %v845_v20  ;;  %v830_v25 = vmax.f32 %v798_v21, 0.0  ;;  %v846_v26 = vmax.f32 %v814_v22, 0.0 }
 0x13a   : > { %v668_v27 = vpop.f32.mrb[28].mxu0  ;;  %v732_v28 = vpop.f32.mrb[28].mxu1 }
 0x13b   : > { %990 = vst.msk [vmem:[%s1545_s25 + $0x30] sm:$0xf] %vm977_vm3, %v1244_v23  ;;  %1006 = vst.msk [vmem:[%s1545_s25 + $0x70] sm:$0xf] %vm977_vm3, %v1260_v24  ;;  %v1245_v29 = vpack.c.bf16 %v830_v25, %v830_v25  ;;  %v1261_v30 = vpack.c.bf16 %v846_v26, %v846_v26  ;;  %v760_v31 = vmul.f32 %v1526_v47, %v668_v27  ;;  %v670_v33 = vpop.f32.mrb[29].mxu0  ;;  %v734_v34 = vpop.f32.mrb[29].mxu1 }
 0x13c   : > { %v776_v32 = vmul.f32 %v1526_v47, %v732_v28  ;;  %v671_v35 = vpop.f32.mrb[30].mxu0  ;;  %v735_v36 = vpop.f32.mrb[30].mxu1 }
 0x13d   : > { %991 = vst.msk [vmem:[%s1545_s25 + $0x34] sm:$0xf] %vm977_vm3, %v1245_v29  ;;  %1007 = vst.msk [vmem:[%s1545_s25 + $0x74] sm:$0xf] %vm977_vm3, %v1261_v30  ;;  %v799_v37 = vadd.f32 %v1531_v49, %v760_v31  ;;  %v761_v39 = vmul.f32 %v1526_v47, %v671_v35  ;;  %v777_v40 = vmul.f32 %v1526_v47, %v735_v36  ;;  %v673_v41 = vpop.f32.mrb[31].mxu0  ;;  %v737_v42 = vpop.f32.mrb[31].mxu1 }
 0x13e   : > { %v815_v38 = vadd.f32 %v1531_v49, %v776_v32 }
 0x13f   : > { %v831_v43 = vmax.f32 %v799_v37, 0.0  ;;  %v800_v45 = vadd.f32 %v1531_v49, %v761_v39  ;;  %v816_v46 = vadd.f32 %v1531_v49, %v777_v40 }
 0x140   : > { %v847_v44 = vmax.f32 %v815_v38, 0.0 }
 0x141   : > { %v1246_v48 = vpack.c.bf16 %v831_v43, %v831_v43  ;;  %v832_v51 = vmax.f32 %v800_v45, 0.0  ;;  %v848_v52 = vmax.f32 %v816_v46, 0.0 }
 0x142   : > { %v1262_v50 = vpack.c.bf16 %v847_v44, %v847_v44 }
 0x143   : > { %992 = vst.msk [vmem:[%s1545_s25 + $0x38] sm:$0xf] %vm977_vm3, %v1246_v48  ;;  %v1247_v53 = vpack.c.bf16 %v832_v51, %v832_v51  ;;  %v1263_v54 = vpack.c.bf16 %v848_v52, %v848_v52 }
 0x144   : > { %1008 = vst.msk [vmem:[%s1545_s25 + $0x78] sm:$0xf] %vm977_vm3, %v1262_v50 }
 0x145   : > { %993 = vst.msk [vmem:[%s1545_s25 + $0x3c] sm:$0xf] %vm977_vm3, %v1247_v53  ;;  %1009 = vst.msk [vmem:[%s1545_s25 + $0x7c] sm:$0xf] %vm977_vm3, %v1263_v54 }
 0x146 PF: > { %s14_s17 = sadd.s32 1, %s1390_s17   ;;  %s1681_s15 = smov %s1386_s16 }
 0x147   : > { %p11_p5 = scmp.ge.s32.totalorder %s14_s17, 10   ;;  %s1682_s16 = smov %s1684_s18 }
 0x149   :  { %13 = sbr.rel (!%p11_p5) target bundleno = 2 (0x2), region = 75 }

</bundles_post_ra>
